<compile_context>
chip_gen: v5e
topology: v5e:2x2
jax: 0.10.0
libtpu: 0.0.40
codegen_flags: <defaults>
</compile_context>

<pallas_src>
import jax
import jax.numpy as jnp
from jax.experimental import pallas as pl
from jax.experimental.pallas import tpu as pltpu

_LANES = 128


def _make_kernel(*, tps, grid_t, t_tile, last_valid, fully_covered):
    """Builds the kernel body with the (static) tiling parameters baked in."""

    def kernel(x_ref, w_ref, o_ref, acc_ref):
        # x_ref:   (B_TILE, F, T_TILE)     streamed activations
        # w_ref:   (F, C_pad)              weight * (1/T), VMEM-resident
        # o_ref:   (1, B_TILE, C_pad) f32  partial logits for this T-split
        # acc_ref: (B_TILE, F, 128)  f32   lane-resident running sums
        s = pl.program_id(1)
        t = pl.program_id(2)

        @pl.when(t == 0)
        def _init():
            acc_ref[...] = jnp.zeros_like(acc_ref)

        def accumulate(valid_len):
            # Pure VPU adds over statically sliced, lane-aligned 128-wide
            # chunks; no per-tile cross-lane (XLU) reduction in the hot loop.
            n_full = valid_len // _LANES
            rem = valid_len % _LANES
            if n_full > 0:
                total = x_ref[:, :, 0:_LANES].astype(jnp.float32)
                for j in range(1, n_full):
                    total = total + x_ref[:, :, j * _LANES:(j + 1) * _LANES].astype(jnp.float32)
                acc_ref[...] += total
            if rem > 0:
                off = n_full * _LANES
                acc_ref[:, :, 0:rem] += x_ref[:, :, off:off + rem].astype(jnp.float32)

        if fully_covered:
            accumulate(t_tile)
        else:
            gt = s * tps + t            # global T-tile index for this step

            @pl.when(gt < grid_t - 1)
            def _full_tile():
                accumulate(t_tile)

            @pl.when(gt == grid_t - 1)
            def _last_tile():
                accumulate(last_valid)  # only read the valid prefix
            # gt > grid_t - 1 (overhang of the last split): accumulate nothing;
            # the zero-initialized accumulator then contributes zero logits.

        # NOTE: correctness relies on the T-tile axis being the innermost grid
        # axis (it is), so this finalize runs after all accumulation steps.
        @pl.when(t == tps - 1)
        def _finalize():
            pooled = jnp.sum(acc_ref[...], axis=-1)       # single XLU reduce
            o_ref[0] = jnp.dot(pooled, w_ref[...],
                               preferred_element_type=jnp.float32)

    return kernel


def conv_asr_decoder_classification(x, weight, bias, *,
                                    b_tile=8,
                                    t_tile_max=2048,
                                    x_block_budget_bytes=16 * 1024 * 1024,
                                    vmem_limit_bytes=48 * 1024 * 1024):
    """x: (B, F, T); weight: (C, F) (PyTorch Linear layout); bias: (C,).

    Returns logits of shape (B, C) in x.dtype.
    """
    B, F, T = x.shape
    C = weight.shape[0]
    itemsize = jnp.dtype(x.dtype).itemsize

    # Fold the 1/T mean into the transposed weight; pad classes to a 128-lane
    # multiple (lane-dense MXU operand, unmasked stores). Cheap: (F, C) only.
    C_pad = pl.cdiv(C, _LANES) * _LANES
    w_t = weight.astype(jnp.float32).T / jnp.float32(T)              # (F, C)
    if C_pad != C:
        w_t = jnp.pad(w_t, ((0, 0), (0, C_pad - C)))                 # (F, C_pad)

    # Batch tiling (no padding of x). Ragged last batch tile: reads of the
    # garbage rows only feed out-of-bounds output rows, which Pallas masks.
    if B >= 8:
        B_TILE = max(8, (min(b_tile, B) // 8) * 8)   # sublane-dense out blocks
    else:
        B_TILE = B                                    # equals full batch dim
    num_b = pl.cdiv(B, B_TILE)

    # Time tiling: balanced, lane-dense tiles sized against a per-block VMEM
    # budget, so 2x (double-buffered) x blocks + resident weight + accumulator
    # stay under the scoped limit on every TPU generation (incl. v7x 64 MiB).
    t_cap = x_block_budget_bytes // max(1, B_TILE * F * itemsize)
    t_cap = max(_LANES, (t_cap // _LANES) * _LANES)
    t_cap = min(t_tile_max, t_cap)
    if T <= t_cap:
        T_TILE = T                                    # single full-extent tile
    else:
        n_t = pl.cdiv(T, t_cap)
        T_TILE = pl.cdiv(pl.cdiv(T, n_t), _LANES) * _LANES   # balanced tiles
    grid_t = pl.cdiv(T, T_TILE)
    last_valid = T - (grid_t - 1) * T_TILE            # valid T of last tile

    # Split the T reduction over two "parallel" grid slots (=> two v7x cores)
    # only when the batch axis alone cannot keep both cores busy.
    n_split = 2 if (num_b == 1 and grid_t >= 2) else 1
    tps = pl.cdiv(grid_t, n_split)                    # T tiles per split
    fully_covered = (last_valid == T_TILE) and (n_split * tps == grid_t)

    if n_split * tps == grid_t:
        x_index_map = lambda b, s, t: (b, 0, s * tps + t)
    else:  # clamp the last split's overhang iterations onto the last tile
        x_index_map = lambda b, s, t: (b, 0, jnp.minimum(s * tps + t, grid_t - 1))

    kernel = _make_kernel(tps=tps, grid_t=grid_t, t_tile=T_TILE,
                          last_valid=last_valid, fully_covered=fully_covered)

    cost = pl.CostEstimate(
        flops=B * F * T + 2 * B * F * C_pad * n_split,
        transcendentals=0,
        bytes_accessed=(B * F * T * itemsize + F * C_pad * 4
                        + n_split * B * C_pad * 4),
    )

    partials = pl.pallas_call(
        kernel,
        out_shape=jax.ShapeDtypeStruct((n_split, B, C_pad), jnp.float32),
        grid_spec=pltpu.PrefetchScalarGridSpec(
            num_scalar_prefetch=0,
            grid=(num_b, n_split, tps),
            in_specs=[
                # x streams over (batch tile, T-split, T tile) -> pipelined DMA.
                pl.BlockSpec((B_TILE, F, T_TILE), x_index_map),
                # weight: constant block index -> DMA'd once, kept resident.
                pl.BlockSpec((F, C_pad), lambda b, s, t: (0, 0)),
            ],
            out_specs=pl.BlockSpec((1, B_TILE, C_pad), lambda b, s, t: (s, b, 0)),
            scratch_shapes=[pltpu.VMEM((B_TILE, F, _LANES), jnp.float32)],
        ),
        compiler_params=pltpu.CompilerParams(
            dimension_semantics=("parallel", "parallel", "arbitrary"),
            vmem_limit_bytes=vmem_limit_bytes,
        ),
        cost_estimate=cost,
    )(x, w_t)

    # Combine per-split partial logits, un-pad the classes, add bias.
    logits = partials.sum(axis=0)[:, :C] + bias.astype(jnp.float32)
    return logits.astype(x.dtype)


def _reference(x, weight, bias):
    pooled = jnp.mean(x.astype(jnp.float32), axis=2)        # (B, F)
    return pooled @ weight.astype(jnp.float32).T + bias.astype(jnp.float32)


if __name__ == "__main__":
    key = jax.random.PRNGKey(0)
    k_x, k_w, k_b = jax.random.split(key, 3)

    B, in_features, T = 2, 32, 16
    num_classes = 8

    x = jax.random.normal(k_x, (B, in_features, T), dtype=jnp.float32)

    # Deterministic parameter init (matches nn.Linear's uniform bound).
    bound = 1.0 / jnp.sqrt(in_features)
    weight = jax.random.uniform(k_w, (num_classes, in_features),
                                minval=-bound, maxval=bound,
                                dtype=jnp.float32)
    bias = jax.random.uniform(k_b, (num_classes,),
                              minval=-bound, maxval=bound,
                              dtype=jnp.float32)

    out = conv_asr_decoder_classification(x, weight, bias)
    out = jax.block_until_ready(out)

    ref = _reference(x, weight, bias)
    assert out.shape == (B, num_classes), out.shape
    assert jnp.allclose(out, ref, atol=1e-5, rtol=1e-5), (
        f"max abs err {jnp.max(jnp.abs(out - ref))}")

    print("KERNEL_OK")
</pallas_src>

<mosaic_0001>
module attributes {stable_mosaic.version = 11 : i64} {
  func.func @kernel(%arg0: i32, %arg1: i32, %arg2: i32, %arg3: memref<2x32x16xf32, #tpu.memory_space<vmem>>, %arg4: memref<32x128xf32, #tpu.memory_space<vmem>>, %arg5: memref<1x2x128xf32, #tpu.memory_space<vmem>>, %arg6: memref<2x32x128xf32, #tpu.memory_space<vmem>>) attributes {dimension_semantics = [#tpu.dimension_semantics<parallel>, #tpu.dimension_semantics<parallel>, #tpu.dimension_semantics<arbitrary>], iteration_bounds = array<i64: 1, 1, 1>, scalar_prefetch = 0 : i64, scratch_operands = 1 : i64, tpu.core_type = #tpu.core_type<tc>, window_params = [{transform_indices = @transform_0, window_bounds = array<i64: 2, 32, 16>}, {pipeline_mode = #tpu.pipeline_mode<synchronous>, transform_indices = @transform_1, window_bounds = array<i64: 32, 128>}, {transform_indices = @transform_2, window_bounds = array<i64: 1, 2, 128>}]} {
    %c0_i32 = arith.constant 0 : i32
    %0 = arith.cmpi eq, %arg2, %c0_i32 : i32
    %1 = arith.extui %0 : i1 to i32
    %c0_i32_0 = arith.constant 0 : i32
    %2 = arith.cmpi ne, %1, %c0_i32_0 : i32
    scf.if %2 {
      %cst = arith.constant 0.000000e+00 : f32
      %10 = vector.broadcast %cst : f32 to vector<2x32x128xf32>
      %c0_11 = arith.constant 0 : index
      %c0_12 = arith.constant 0 : index
      %c0_13 = arith.constant 0 : index
      %11 = vector.load %arg6[%c0_11, %c0_12, %c0_13] : memref<2x32x128xf32, #tpu.memory_space<vmem>>, vector<2x32x128xf32>
      tpu.vector_store %arg6[%c0_11, %c0_12, %c0_13], %10 {strides = array<i32>} : memref<2x32x128xf32, #tpu.memory_space<vmem>>, vector<2x32x128xf32>,
    } else {
    }
    %c0 = arith.constant 0 : index
    %c0_1 = arith.constant 0 : index
    %c0_2 = arith.constant 0 : index
    %3 = vector.load %arg6[%c0, %c0_1, %c0_2] : memref<2x32x128xf32, #tpu.memory_space<vmem>>, vector<2x32x16xf32>
    %c0_3 = arith.constant 0 : index
    %c0_4 = arith.constant 0 : index
    %c0_5 = arith.constant 0 : index
    %4 = vector.load %arg3[%c0_3, %c0_4, %c0_5] : memref<2x32x16xf32, #tpu.memory_space<vmem>>, vector<2x32x16xf32>
    %5 = arith.addf %3, %4 : vector<2x32x16xf32>
    %c0_6 = arith.constant 0 : index
    %c0_7 = arith.constant 0 : index
    %c0_8 = arith.constant 0 : index
    %6 = vector.load %arg6[%c0_6, %c0_7, %c0_8] : memref<2x32x128xf32, #tpu.memory_space<vmem>>, vector<2x32x16xf32>
    tpu.vector_store %arg6[%c0_6, %c0_7, %c0_8], %5 {strides = array<i32>} : memref<2x32x128xf32, #tpu.memory_space<vmem>>, vector<2x32x16xf32>,
    %c0_i32_9 = arith.constant 0 : i32
    %7 = arith.cmpi eq, %arg2, %c0_i32_9 : i32
    %8 = arith.extui %7 : i1 to i32
    %c0_i32_10 = arith.constant 0 : i32
    %9 = arith.cmpi ne, %8, %c0_i32_10 : i32
    scf.if %9 {
      %c0_11 = arith.constant 0 : index
      %c0_12 = arith.constant 0 : index
      %c0_13 = arith.constant 0 : index
      %10 = vector.load %arg6[%c0_11, %c0_12, %c0_13] : memref<2x32x128xf32, #tpu.memory_space<vmem>>, vector<2x32x128xf32>
      %cst = arith.constant dense<0.000000e+00> : vector<2x32xf32>
      %11 = vector.multi_reduction <add>, %10, %cst [2] : vector<2x32x128xf32> to vector<2x32xf32>
      %c0_14 = arith.constant 0 : index
      %c0_15 = arith.constant 0 : index
      %12 = vector.load %arg4[%c0_14, %c0_15] : memref<32x128xf32, #tpu.memory_space<vmem>>, vector<32x128xf32>
      %cst_16 = arith.constant dense<0.000000e+00> : vector<2x128xf32>
      %13 = tpu.matmul %11, %12, %cst_16 {dimension_numbers = #tpu.dot_dimension_numbers<[1], [0], [0], [1], [0, 0, 1, 1], [], []>} : vector<2x32xf32>, vector<32x128xf32>, vector<2x128xf32> -> vector<2x128xf32>
      %c0_17 = arith.constant 0 : index
      %c0_18 = arith.constant 0 : index
      %c0_19 = arith.constant 0 : index
      %14 = vector.load %arg5[%c0_17, %c0_18, %c0_19] : memref<1x2x128xf32, #tpu.memory_space<vmem>>, vector<1x2x128xf32>
      %15 = vector.shape_cast %14 : vector<1x2x128xf32> to vector<2x128xf32>
      %16 = vector.shape_cast %13 : vector<2x128xf32> to vector<1x2x128xf32>
      tpu.vector_store %arg5[%c0_17, %c0_18, %c0_19], %16 {strides = array<i32>} : memref<1x2x128xf32, #tpu.memory_space<vmem>>, vector<1x2x128xf32>,
    } else {
    }
    return
  }
  func.func @transform_0(%arg0: i32, %arg1: i32, %arg2: i32) -> (i32, i32, i32) {
    %c1_i32 = arith.constant 1 : i32
    %0 = arith.muli %arg1, %c1_i32 : i32
    %1 = arith.addi %0, %arg2 : i32
    %c0_i32 = arith.constant 0 : i32
    %c0_i32_0 = arith.constant 0 : i32
    return %arg0, %c0_i32, %1 : i32, i32, i32
  }
  func.func @transform_1(%arg0: i32, %arg1: i32, %arg2: i32) -> (i32, i32) {
    %c0_i32 = arith.constant 0 : i32
    %c0_i32_0 = arith.constant 0 : i32
    %c0_i32_1 = arith.constant 0 : i32
    return %c0_i32, %c0_i32_0 : i32, i32
  }
  func.func @transform_2(%arg0: i32, %arg1: i32, %arg2: i32) -> (i32, i32, i32) {
    %c0_i32 = arith.constant 0 : i32
    %c0_i32_0 = arith.constant 0 : i32
    return %arg1, %arg0, %c0_i32 : i32, i32, i32
  }
}

</mosaic_0001>

<bundles_post_ra>
// kernel: tpu_custom_call.1
= control target key start
LH: loop header
LB: loop body
LE: loop exit
PB: predicated region body
PF: predicated region fallthrough
CT: control target
= control target key end

     0   :  { %vm65_vm0 = vcmask 130048   ;;  %v212_v1 = vmov 0.0   ;;  %s276_s0 = inlined_call_operand.vmem [shape: f32[2,32,16], index: 0, kind: input, shape index: {}]   ;;  %s277_s1 = inlined_call_operand.vmem [shape: f32[32,128], index: 1, kind: input, shape index: {}]   ;;  %s278_s2 = inlined_call_operand.hbm [shape: f32[1,2,128], index: 2, kind: output, shape index: {}]  }
   0x1   :  { %v53_v0 = vld [vmem:[%s276_s0 + $0x20] sm:$0xff]  ;;  %37 = vst [vmem:[#allocation2 + $0x20] sm:$0xff] %v212_v1 }
   0x2   :  { %33 = vst [vmem:[#allocation2] sm:$0xff] %v212_v1 }
   0x3   :  { %7 = vsyncpa [#allocation4], 0  ;;  %70 = vst.msk [vmem:[#allocation2 + $0x20] sm:$0xff] %vm65_vm0, %v53_v0  ;;  %v49_v2 = vld [vmem:[%s276_s0] sm:$0xff]  ;;  %v51_v3 = vld [vmem:[%s276_s0 + $0x10] sm:$0xff]  ;;  %v113_v22 = vlaneseq  ;;  %vm118_vm1 = vcmask 130112  }
   0x4   :  { %34 = vst [vmem:[#allocation2 + $0x8] sm:$0xff] %v212_v1  ;;  %v54_v4 = vld [vmem:[%s276_s0 + $0x28] sm:$0xff]  ;;  %v55_v6 = vld [vmem:[%s276_s0 + $0x30] sm:$0xff]  ;;  %v56_v7 = vld [vmem:[%s276_s0 + $0x38] sm:$0xff]  ;;  %vm122_vm2 = vcmask 195712   ;;  %vm126_vm3 = vcmask 261312  }
   0x5   :  { %35 = vst [vmem:[#allocation2 + $0x10] sm:$0xff] %v212_v1  ;;  %v50_v5 = vld [vmem:[%s276_s0 + $0x8] sm:$0xff]  ;;  %v52_v8 = vld [vmem:[%s276_s0 + $0x18] sm:$0xff]  ;;  %v103_v18 = vld [vmem:[%s277_s1 + $0x10] sm:$0xff]  ;;  %v114_v26 = vand.u32 127, %v113_v22  ;;  %vm135_vm4 = vcmask 1041409  }
   0x6   :  { %36 = vst [vmem:[#allocation2 + $0x18] sm:$0xff] %v212_v1  ;;  %v104_v17 = vld [vmem:[%s277_s1 + $0x18] sm:$0xff]  ;;  %v102_v19 = vld [vmem:[%s277_s1 + $0x8] sm:$0xff]  ;;  %v101_v20 = vld [vmem:[%s277_s1] sm:$0xff]  ;;  %vm137_vm5 = vcmask 261120   ;;  %s213_s1 = smov [#allocation3]  }
   0x7   :  { %38 = vst [vmem:[#allocation2 + $0x28] sm:$0xff] %v212_v1  ;;  %152 = vmatpush.msra.mxu0 %v104_v17  ;;  %v116_v27 = vadd.s32 4294967288, %v114_v26  ;;  %v124_v31 = vadd.s32 4294967272, %v114_v26  ;;  %v120_v32 = vadd.s32 4294967280, %v114_v26  ;;  %s166_s4 = sshll.u32 %s213_s1, 4  ;;  %s168_s7 = sshll.u32 %s278_s2, 4  ;;  %s167_s4 = int_to_ptr.vmem [resolvable:$true] %s166_s4  ;;  %s169_s7 = int_to_ptr.hbm [resolvable:$true] %s168_s7 }
   0x8   :  { %39 = vst [vmem:[#allocation2 + $0x30] sm:$0xff] %v212_v1 }
   0x9   :  { %40 = vst [vmem:[#allocation2 + $0x38] sm:$0xff] %v212_v1  ;;  %153 = vmatpush.msra.mxu0 %v103_v18 }
   0xa   :  { %v81_v9 = vld [vmem:[#allocation2 + $0x20] sm:$0xff]  ;;  %66 = vst.msk [vmem:[#allocation2] sm:$0xff] %vm65_vm0, %v49_v2 }
   0xb   :  { %93 = vadd.xlane.f32.xlu1 %v81_v9  ;;  %68 = vst.msk [vmem:[#allocation2 + $0x10] sm:$0xff] %vm65_vm0, %v51_v3  ;;  %154 = vmatpush.msra.mxu0 %v102_v19 }
   0xc   :  { %71 = vst.msk [vmem:[#allocation2 + $0x28] sm:$0xff] %vm65_vm0, %v54_v4 }
   0xd   :  { %67 = vst.msk [vmem:[#allocation2 + $0x8] sm:$0xff] %vm65_vm0, %v50_v5  ;;  %155 = vmatpush.msra.mxu0 %v101_v20 }
   0xe   :  { %72 = vst.msk [vmem:[#allocation2 + $0x30] sm:$0xff] %vm65_vm0, %v55_v6 }
   0xf   :  { %73 = vst.msk [vmem:[#allocation2 + $0x38] sm:$0xff] %vm65_vm0, %v56_v7 }
  0x10   :  { %69 = vst.msk [vmem:[#allocation2 + $0x18] sm:$0xff] %vm65_vm0, %v52_v8 }
  0x11   :  { %v77_v10 = vld [vmem:[#allocation2] sm:$0xff] }
  0x12   :  { %85 = vadd.xlane.f32.xlu0 %v77_v10  ;;  %v79_v11 = vld [vmem:[#allocation2 + $0x10] sm:$0xff] }
  0x13   :  { %89 = vadd.xlane.f32.xlu2 %v79_v11  ;;  %v82_v12 = vld [vmem:[#allocation2 + $0x28] sm:$0xff] }
  0x14   :  { %95 = vadd.xlane.f32.xlu1 %v82_v12  ;;  %v78_v13 = vld [vmem:[#allocation2 + $0x8] sm:$0xff] }
  0x15   :  { %v83_v14 = vld [vmem:[#allocation2 + $0x30] sm:$0xff] }
  0x16   :  { %v84_v15 = vld [vmem:[#allocation2 + $0x38] sm:$0xff] }
  0x17   :  { %v80_v16 = vld [vmem:[#allocation2 + $0x18] sm:$0xff] }
  0x1a   :  { %87 = vadd.xlane.f32.xlu0 %v78_v13 }
  0x1b   :  { %97 = vadd.xlane.f32.xlu2 %v83_v14 }
  0x1c   :  { %99 = vadd.xlane.f32.xlu1 %v84_v15 }
  0x22   :  { %91 = vadd.xlane.f32.xlu0 %v80_v16 }
  0x7e   :  { %v94_v21 = vpop.xlane.xlu1 %93 }
  0x7f   :  { %v128_v34 = vperm.slane %v94_v21, %v114_v26 }
  0x85   :  { %v86_v23 = vpop.xlane.xlu0 %85 }
  0x86   :  { %v90_v24 = vpop.xlane.xlu2 %89  ;;  %v115_v37 = vperm.slane %v86_v23, %v114_v26 }
  0x87   :  { %v96_v25 = vpop.xlane.xlu1 %95  ;;  %v121_v41 = vperm.slane %v90_v24, %v120_v32 }
  0x88   :  { %v129_v29 = vperm.slane %v96_v25, %v116_v27 }
  0x8a   :  { %v130_v38 = vsel %vm118_vm1, %v129_v29, %v128_v34 }
  0x8d   :  { %v88_v28 = vpop.xlane.xlu0 %87 }
  0x8e   :  { %v98_v30 = vpop.xlane.xlu2 %97  ;;  %v117_v35 = vperm.slane %v88_v28, %v116_v27 }
  0x8f   :  { %v100_v33 = vpop.xlane.xlu1 %99  ;;  %v131_v36 = vperm.slane %v98_v30, %v120_v32 }
  0x90   :  { %v133_v39 = vperm.slane %v100_v33, %v124_v31  ;;  %v119_v40 = vsel %vm118_vm1, %v117_v35, %v115_v37 }
  0x91   :  { %v132_v42 = vsel %vm122_vm2, %v131_v36, %v130_v38  ;;  %v123_v46 = vsel %vm122_vm2, %v121_v41, %v119_v40 }
  0x92   :  { %v134_v45 = vsel %vm126_vm3, %v133_v39, %v132_v42 }
  0x95   :  { %v92_v43 = vpop.xlane.xlu0 %91 }
  0x96   :  { %v125_v44 = vperm.slane %v92_v43, %v124_v31 }
  0x98   :  { %v127_v47 = vsel %vm126_vm3, %v125_v44, %v123_v46 }
  0x99   :  { %v136_v48 = vsel %vm135_vm4, %v134_v45, %v127_v47 }
  0x9a   :  { %183 = vmatmul.msk.f32.vlgmr.msra.gmra.mxu0 %vm137_vm5, %v136_v48 }
 0x117   :  { %v157_v49 = vpop.f32.mrf.mxu0 }
 0x118   :  { %160 = vst [vmem:[#allocation3] sm:$0x3] %v157_v49 }
 0x119   :  { %171 = dma.vmem_to_hbm [thread:$0]  %s167_s4, 32, %s169_s7, [#allocation4]  }
 0x11a   :  { %210 = dma.done.wait [#allocation4], 32  }
 0x11b   :  { %211 = vsyncadd [#allocation4], 4294967264 }
 0x11c   :  { %176 = vsyncpa [#allocation4], 1 }

</bundles_post_ra>
